<compile_context>
chip_gen: v5e
topology: v5e:2x2
jax: 0.10.0
libtpu: 0.0.40
codegen_flags: <defaults>
</compile_context>

<pallas_src>
import jax
import jax.numpy as jnp
from jax.experimental import pallas as pl
from jax.experimental.pallas import tpu as pltpu

BATCH_TILE = 1024   # rows per grid step in the gridded (large-batch) path
N_PARAMS = 16       # 14 real scalars, padded to 16


def _mlp_kernel(p_ref, x_ref, o_ref):
    """p_ref: SMEM f32[16]; x_ref: VMEM f32[tb, 3]; o_ref: VMEM f32[tb, 2]."""
    x = x_ref[...]                       # [tb, 3]
    x0 = x[:, 0:1]
    x1 = x[:, 1:2]
    x2 = x[:, 2:3]

    # fc1 (3 -> 2): VPU broadcast-MACs with SMEM-scalar weights; MXU not needed.
    h0 = x0 * p_ref[0] + x1 * p_ref[1] + x2 * p_ref[2] + p_ref[3]
    h1 = x0 * p_ref[4] + x1 * p_ref[5] + x2 * p_ref[6] + p_ref[7]
    h0 = 1.0 / (1.0 + jnp.exp(-h0))      # sigmoid (exp on EUP)
    h1 = 1.0 / (1.0 + jnp.exp(-h1))

    # fc2 (2 -> 2)
    z0 = h0 * p_ref[8] + h1 * p_ref[9] + p_ref[10]
    z1 = h0 * p_ref[11] + h1 * p_ref[12] + p_ref[13]

    # Assemble the 2-lane-wide output and apply the final sigmoid once.
    col = jax.lax.broadcasted_iota(jnp.int32, o_ref.shape, dimension=1)
    z = jnp.where(col == 0, z0, z1)      # [tb, 2]
    o_ref[...] = 1.0 / (1.0 + jnp.exp(-z))


def _prepare_params(w1, b1, w2, b2):
    """Pack PyTorch-layout params ([out,in] weights) into one f32[16] for SMEM."""
    w1 = jnp.asarray(w1, jnp.float32).reshape(2, 3)
    b1 = jnp.asarray(b1, jnp.float32).reshape(2)
    w2 = jnp.asarray(w2, jnp.float32).reshape(2, 2)
    b2 = jnp.asarray(b2, jnp.float32).reshape(2)
    p = jnp.concatenate([
        w1[0], b1[0:1],          # p[0:4]  : fc1 row 0 weights + bias
        w1[1], b1[1:2],          # p[4:8]  : fc1 row 1 weights + bias
        w2[0], b2[0:1],          # p[8:11] : fc2 row 0 weights + bias
        w2[1], b2[1:2],          # p[11:14]: fc2 row 1 weights + bias
    ])
    return jnp.pad(p, (0, N_PARAMS - p.shape[0]))


def make_simple_nn_forward(w1, b1, w2, b2):
    """Returns forward(x): [B,3] (or [3]) f32 -> [B,2] (or [2]) f32."""
    params = _prepare_params(w1, b1, w2, b2)   # packed ONCE, outside call path

    @jax.jit
    def forward(x):
        squeeze = x.ndim == 1
        xb = x[None, :] if squeeze else x
        xb = xb.astype(jnp.float32)
        B = xb.shape[0]
        if B <= BATCH_TILE:
            tile_b = B              # one exact-size block: no padding, no grid loop
        else:
            tile_b = BATCH_TILE     # multiple of 8; >= 2 "parallel" steps on v7x
        grid = (pl.cdiv(B, tile_b),)   # ragged last block masked by Pallas
        out = pl.pallas_call(
            _mlp_kernel,
            out_shape=jax.ShapeDtypeStruct((B, 2), jnp.float32),
            grid=grid,
            in_specs=[
                pl.BlockSpec(memory_space=pltpu.MemorySpace.SMEM),    # params
                pl.BlockSpec((tile_b, 3), lambda i: (i, 0)),          # x rows
            ],
            out_specs=pl.BlockSpec((tile_b, 2), lambda i: (i, 0)),
            compiler_params=pltpu.CompilerParams(
                dimension_semantics=("parallel",)),
        )(params, xb)
        return out[0] if squeeze else out

    return forward


def _reference_forward(x, w1, b1, w2, b2):
    h = jax.nn.sigmoid(x @ w1.T + b1)
    return jax.nn.sigmoid(h @ w2.T + b2)


if __name__ == "__main__":
    # Deterministic parameters from SimpleNN.custom_weights (PyTorch layout).
    w1 = jnp.array([[0.1, 0.2, 0.6], [0.4, 0.3, 0.1]], dtype=jnp.float32)
    b1 = jnp.array([0.4, 0.2], dtype=jnp.float32)
    w2 = jnp.array([[0.2, 0.1], [0.1, 0.4]], dtype=jnp.float32)
    b2 = jnp.array([0.6, 0.3], dtype=jnp.float32)

    forward = make_simple_nn_forward(w1, b1, w2, b2)

    # Small batch: module's fixed example + a small random batch (single block).
    key = jax.random.PRNGKey(0)
    x_fixed = jnp.array([[3.0, 0.0, 1.0]], dtype=jnp.float32)
    x_rand = jax.random.normal(key, (3, 3), dtype=jnp.float32)
    x_small = jnp.concatenate([x_fixed, x_rand], axis=0)           # [4, 3]

    out_small = jax.block_until_ready(forward(x_small))
    ref_small = _reference_forward(x_small, w1, b1, w2, b2)
    assert out_small.shape == (4, 2)
    assert jnp.allclose(out_small, ref_small, atol=1e-5, rtol=1e-5), (out_small, ref_small)

    # 1-D input, as in the original torch script (x = tensor([3., 0., 1.])).
    out_vec = jax.block_until_ready(forward(x_fixed[0]))
    assert out_vec.shape == (2,)
    assert jnp.allclose(out_vec, ref_small[0], atol=1e-5, rtol=1e-5)

    # Large batch: multiple "parallel" grid steps + ragged (masked) last block.
    x_big = jax.random.normal(jax.random.PRNGKey(1), (2500, 3), dtype=jnp.float32)
    out_big = jax.block_until_ready(forward(x_big))
    ref_big = _reference_forward(x_big, w1, b1, w2, b2)
    assert out_big.shape == (2500, 2)
    assert jnp.allclose(out_big, ref_big, atol=1e-5, rtol=1e-5)

    print("KERNEL_OK")
</pallas_src>

<mosaic_0001>
module attributes {stable_mosaic.version = 11 : i64} {
  func.func @_mlp_kernel(%arg0: i32, %arg1: memref<16xf32, #tpu.memory_space<smem>>, %arg2: memref<4x3xf32, #tpu.memory_space<vmem>>, %arg3: memref<4x2xf32, #tpu.memory_space<vmem>>) attributes {dimension_semantics = [#tpu.dimension_semantics<parallel>], iteration_bounds = array<i64: 1>, scalar_prefetch = 0 : i64, scratch_operands = 0 : i64, tpu.core_type = #tpu.core_type<tc>, window_params = [{transform_indices = @transform_0, window_bounds = array<i64: 16>}, {transform_indices = @transform_1, window_bounds = array<i64: 4, 3>}, {transform_indices = @transform_2, window_bounds = array<i64: 4, 2>}]} {
    %c0 = arith.constant 0 : index
    %c0_0 = arith.constant 0 : index
    %0 = vector.load %arg2[%c0, %c0_0] : memref<4x3xf32, #tpu.memory_space<vmem>>, vector<4x3xf32>
    %1 = vector.extract_strided_slice %0 {offsets = [0, 0], sizes = [4, 1], strides = [1, 1]} : vector<4x3xf32> to vector<4x1xf32>
    %2 = vector.extract_strided_slice %0 {offsets = [0, 1], sizes = [4, 1], strides = [1, 1]} : vector<4x3xf32> to vector<4x1xf32>
    %3 = vector.extract_strided_slice %0 {offsets = [0, 2], sizes = [4, 1], strides = [1, 1]} : vector<4x3xf32> to vector<4x1xf32>
    %c0_1 = arith.constant 0 : index
    %4 = memref.load %arg1[%c0_1] : memref<16xf32, #tpu.memory_space<smem>>
    %5 = vector.broadcast %4 : f32 to vector<4x1xf32>
    %6 = arith.mulf %1, %5 : vector<4x1xf32>
    %c1 = arith.constant 1 : index
    %7 = memref.load %arg1[%c1] : memref<16xf32, #tpu.memory_space<smem>>
    %8 = vector.broadcast %7 : f32 to vector<4x1xf32>
    %9 = arith.mulf %2, %8 : vector<4x1xf32>
    %10 = arith.addf %6, %9 : vector<4x1xf32>
    %c2 = arith.constant 2 : index
    %11 = memref.load %arg1[%c2] : memref<16xf32, #tpu.memory_space<smem>>
    %12 = vector.broadcast %11 : f32 to vector<4x1xf32>
    %13 = arith.mulf %3, %12 : vector<4x1xf32>
    %14 = arith.addf %10, %13 : vector<4x1xf32>
    %c3 = arith.constant 3 : index
    %15 = memref.load %arg1[%c3] : memref<16xf32, #tpu.memory_space<smem>>
    %16 = vector.broadcast %15 : f32 to vector<4x1xf32>
    %17 = arith.addf %14, %16 : vector<4x1xf32>
    %c4 = arith.constant 4 : index
    %18 = memref.load %arg1[%c4] : memref<16xf32, #tpu.memory_space<smem>>
    %19 = vector.broadcast %18 : f32 to vector<4x1xf32>
    %20 = arith.mulf %1, %19 : vector<4x1xf32>
    %c5 = arith.constant 5 : index
    %21 = memref.load %arg1[%c5] : memref<16xf32, #tpu.memory_space<smem>>
    %22 = vector.broadcast %21 : f32 to vector<4x1xf32>
    %23 = arith.mulf %2, %22 : vector<4x1xf32>
    %24 = arith.addf %20, %23 : vector<4x1xf32>
    %c6 = arith.constant 6 : index
    %25 = memref.load %arg1[%c6] : memref<16xf32, #tpu.memory_space<smem>>
    %26 = vector.broadcast %25 : f32 to vector<4x1xf32>
    %27 = arith.mulf %3, %26 : vector<4x1xf32>
    %28 = arith.addf %24, %27 : vector<4x1xf32>
    %c7 = arith.constant 7 : index
    %29 = memref.load %arg1[%c7] : memref<16xf32, #tpu.memory_space<smem>>
    %30 = vector.broadcast %29 : f32 to vector<4x1xf32>
    %31 = arith.addf %28, %30 : vector<4x1xf32>
    %cst = arith.constant 0.000000e+00 : f32
    %32 = vector.broadcast %cst : f32 to vector<4x1xf32>
    %33 = arith.subf %32, %17 : vector<4x1xf32>
    %34 = math.exp %33 : vector<4x1xf32>
    %cst_2 = arith.constant 1.000000e+00 : f32
    %35 = vector.broadcast %cst_2 : f32 to vector<4x1xf32>
    %36 = arith.addf %35, %34 : vector<4x1xf32>
    %cst_3 = arith.constant 1.000000e+00 : f32
    %37 = vector.broadcast %cst_3 : f32 to vector<4x1xf32>
    %38 = arith.divf %37, %36 : vector<4x1xf32>
    %cst_4 = arith.constant 0.000000e+00 : f32
    %39 = vector.broadcast %cst_4 : f32 to vector<4x1xf32>
    %40 = arith.subf %39, %31 : vector<4x1xf32>
    %41 = math.exp %40 : vector<4x1xf32>
    %cst_5 = arith.constant 1.000000e+00 : f32
    %42 = vector.broadcast %cst_5 : f32 to vector<4x1xf32>
    %43 = arith.addf %42, %41 : vector<4x1xf32>
    %cst_6 = arith.constant 1.000000e+00 : f32
    %44 = vector.broadcast %cst_6 : f32 to vector<4x1xf32>
    %45 = arith.divf %44, %43 : vector<4x1xf32>
    %c8 = arith.constant 8 : index
    %46 = memref.load %arg1[%c8] : memref<16xf32, #tpu.memory_space<smem>>
    %47 = vector.broadcast %46 : f32 to vector<4x1xf32>
    %48 = arith.mulf %38, %47 : vector<4x1xf32>
    %c9 = arith.constant 9 : index
    %49 = memref.load %arg1[%c9] : memref<16xf32, #tpu.memory_space<smem>>
    %50 = vector.broadcast %49 : f32 to vector<4x1xf32>
    %51 = arith.mulf %45, %50 : vector<4x1xf32>
    %52 = arith.addf %48, %51 : vector<4x1xf32>
    %c10 = arith.constant 10 : index
    %53 = memref.load %arg1[%c10] : memref<16xf32, #tpu.memory_space<smem>>
    %54 = vector.broadcast %53 : f32 to vector<4x1xf32>
    %55 = arith.addf %52, %54 : vector<4x1xf32>
    %c11 = arith.constant 11 : index
    %56 = memref.load %arg1[%c11] : memref<16xf32, #tpu.memory_space<smem>>
    %57 = vector.broadcast %56 : f32 to vector<4x1xf32>
    %58 = arith.mulf %38, %57 : vector<4x1xf32>
    %c12 = arith.constant 12 : index
    %59 = memref.load %arg1[%c12] : memref<16xf32, #tpu.memory_space<smem>>
    %60 = vector.broadcast %59 : f32 to vector<4x1xf32>
    %61 = arith.mulf %45, %60 : vector<4x1xf32>
    %62 = arith.addf %58, %61 : vector<4x1xf32>
    %c13 = arith.constant 13 : index
    %63 = memref.load %arg1[%c13] : memref<16xf32, #tpu.memory_space<smem>>
    %64 = vector.broadcast %63 : f32 to vector<4x1xf32>
    %65 = arith.addf %62, %64 : vector<4x1xf32>
    %66 = tpu.iota {dimensions = array<i32: 1>} : vector<4x2xi32>
    %c0_i32 = arith.constant 0 : i32
    %67 = vector.broadcast %c0_i32 : i32 to vector<4x2xi32>
    %68 = arith.cmpi eq, %66, %67 : vector<4x2xi32>
    %69 = vector.shape_cast %55 : vector<4x1xf32> to vector<4x1xf32>
    %70 = vector.broadcast %69 : vector<4x1xf32> to vector<4x2xf32>
    %71 = vector.shape_cast %65 : vector<4x1xf32> to vector<4x1xf32>
    %72 = vector.broadcast %71 : vector<4x1xf32> to vector<4x2xf32>
    %73 = arith.select %68, %70, %72 : vector<4x2xi1>, vector<4x2xf32>
    %cst_7 = arith.constant 0.000000e+00 : f32
    %74 = vector.broadcast %cst_7 : f32 to vector<4x2xf32>
    %75 = arith.subf %74, %73 : vector<4x2xf32>
    %76 = math.exp %75 : vector<4x2xf32>
    %cst_8 = arith.constant 1.000000e+00 : f32
    %77 = vector.broadcast %cst_8 : f32 to vector<4x2xf32>
    %78 = arith.addf %77, %76 : vector<4x2xf32>
    %cst_9 = arith.constant 1.000000e+00 : f32
    %79 = vector.broadcast %cst_9 : f32 to vector<4x2xf32>
    %80 = arith.divf %79, %78 : vector<4x2xf32>
    %c0_10 = arith.constant 0 : index
    %c0_11 = arith.constant 0 : index
    %81 = vector.load %arg3[%c0_10, %c0_11] : memref<4x2xf32, #tpu.memory_space<vmem>>, vector<4x2xf32>
    tpu.vector_store %arg3[%c0_10, %c0_11], %80 {strides = array<i32>} : memref<4x2xf32, #tpu.memory_space<vmem>>, vector<4x2xf32>,
    return
  }
  func.func @transform_0(%arg0: i32) -> i32 {
    %c0_i32 = arith.constant 0 : i32
    %c0_i32_0 = arith.constant 0 : i32
    return %c0_i32 : i32
  }
  func.func @transform_1(%arg0: i32) -> (i32, i32) {
    %c0_i32 = arith.constant 0 : i32
    %c0_i32_0 = arith.constant 0 : i32
    return %arg0, %c0_i32 : i32, i32
  }
  func.func @transform_2(%arg0: i32) -> (i32, i32) {
    %c0_i32 = arith.constant 0 : i32
    %c0_i32_0 = arith.constant 0 : i32
    return %arg0, %c0_i32 : i32, i32
  }
}

</mosaic_0001>

<bundles_post_ra>
// kernel: forward.1
= control target key start
LH: loop header
LB: loop body
LE: loop exit
PB: predicated region body
PF: predicated region fallthrough
CT: control target
= control target key end

     0   :  { %7 = vsyncpa [#allocation4], 0  ;;  %s286_s0 = inlined_call_operand.hbm [shape: f32[16], index: 0, kind: input, shape index: {}]   ;;  %s287_s1 = inlined_call_operand.hbm [shape: f32[4,3], index: 1, kind: input, shape index: {}]   ;;  %s288_s2 = inlined_call_operand.vmem [shape: f32[4,2], index: 2, kind: output, shape index: {}]  }
   0x1   :  { %s14_s11 = sshll.u32 %s286_s0, 4  ;;  %s15_s11 = int_to_ptr.hbm [resolvable:$true] %s14_s11 }
   0x2   :  { %8 = vsyncpa [#allocation3], 0  ;;  %s23_s14 = sshll.u32 %s287_s1, 4  ;;  %s254_s15 = smov [#allocation2]   ;;  %s24_s14 = int_to_ptr.hbm [resolvable:$true] %s23_s14 }
   0x3   :  { %17 = dma.hbm_to_smem %s15_s11, 16, %s254_s15, [#allocation4]  }
   0x4   :  { %s255_s16 = smov [#allocation5]  }
   0x5   :  { %s25_s17 = sshll.u32 %s255_s16, 4  ;;  %s26_s17 = int_to_ptr.vmem [resolvable:$true] %s25_s17 }
   0x6   :  { %28 = dma.hbm_to_vmem [thread:$0]  %s24_s14, 64, %s26_s17, [#allocation3]  }
   0x7   :  { %250 = dma.done.wait [#allocation4], 16  }
   0x8   :  { %251 = vsyncadd [#allocation4], 4294967280 }
   0x9   :  { %252 = dma.done.wait [#allocation3], 64  }
   0xa   :  { %253 = vsyncadd [#allocation3], 4294967232 }
   0xb   :  { %37 = sfence }
   0xc   :  { %s182_s18 = sld [smem:[#allocation2 + $0x1]]  ;;  %v38_v0 = vld [vmem:[#allocation5] sm:$0xf]  ;;  %s256_s1 = smov 127   ;;  %v258_v11 = vmov 0   ;;  %vm174_vm11 = vcmask 11264  }
   0xd   :  { %s183_s0 = sld [smem:[#allocation2 + $0x2]]  ;;  %s257_s21 = smov 126   ;;  %200 = vset.pattern.permute.xlu2 %v258_v11  ;;  %201 = vset.pattern.permute.xlu0 %v258_v11 }
   0xe   :  { %s186_s19 = sld [smem:[#allocation2 + $0x5]] }
   0xf   :  { %s187_s20 = sld [smem:[#allocation2 + $0x6]] }
  0x10   :  { %s39_s22 = sld [smem:[#allocation2]] }
  0x11   :  { %s184_s23 = sld [smem:[#allocation2 + $0x3]] }
  0x12   :  { %v43_v1 = vstv %s182_s18  ;;  %s185_s24 = sld [smem:[#allocation2 + $0x4]] }
  0x13   :  { %v44_v2 = vmul.f32 %v43_v1, %v38_v0  ;;  %v51_v3 = vstv %s183_s0  ;;  %s188_s25 = sld [smem:[#allocation2 + $0x7]] }
  0x14   :  { %v52_v4 = vmul.f32 %v51_v3, %v38_v0  ;;  %v65_v5 = vstv %s186_s19  ;;  %s280_s26 = sld [smem:[#allocation2 + $0x8]] }
  0x15   :  { %46 = vrot.lane.b32.xlu0 %v44_v2, %s256_s1  ;;  %v73_v6 = vstv %s187_s20  ;;  %v66_v7 = vmul.f32 %v65_v5, %v38_v0  ;;  %s190_s27 = sld [smem:[#allocation2 + $0x9]] }
  0x16   :  { %54 = vrot.lane.b32.xlu1 %v52_v4, %s257_s21  ;;  %v74_v8 = vmul.f32 %v73_v6, %v38_v0  ;;  %v40_v9 = vstv %s39_s22  ;;  %s193_s28 = sld [smem:[#allocation2 + $0xc]]  ;;  %v141_v4 = vlaneseq }
  0x17   :  { %v41_v10 = vmul.f32 %v40_v9, %v38_v0  ;;  %v59_v15 = vstv %s184_s23  ;;  %s191_s29 = sld [smem:[#allocation2 + $0xa]] }
  0x18   :  { %v62_v16 = vstv %s185_s24  ;;  %s192_s30 = sld [smem:[#allocation2 + $0xb]]  ;;  %v142_v6 = vand.u32 127, %v141_v4 }
  0x19   :  { %v63_v19 = vmul.f32 %v62_v16, %v38_v0  ;;  %v81_v25 = vstv %s188_s25  ;;  %s194_s3 = sld [smem:[#allocation2 + $0xd]] }
  0x1a   :  { %v122_v52 = vstv %s280_s26  ;;  %vm143_vm8 = vcmp.eq.s32.totalorder %v142_v6, 0 }
  0x1b   :  { %v125_v53 = vstv %s190_s27 }
  0x1c   :  { %v135_v59 = vstv %s193_s28 }
  0x1d   :  { %68 = vrot.lane.b32.xlu0 %v66_v7, %s256_s1  ;;  %v129_v58 = vstv %s191_s29 }
  0x1e   :  { %76 = vrot.lane.b32.xlu1 %v74_v8, %s257_s21  ;;  %v132_v61 = vstv %s192_s30 }
  0x1f   :  { %v139_v2 = vstv %s194_s3 }
  0x87   :  { %v47_v12 = vpop.permute.xlu0 %46 }
  0x88   :  { %v49_v13 = vadd.f32 %v47_v12, %v41_v10  ;;  %v55_v14 = vpop.permute.xlu1 %54 }
  0x8a   :  { %v57_v17 = vadd.f32 %v55_v14, %v49_v13 }
  0x8c   :  { %v60_v18 = vadd.f32 %v59_v15, %v57_v17 }
  0x8e   :  { %v83_v20 = vsub.f32 0.0, %v60_v18 }
  0x8f   :  { %v69_v21 = vpop.permute.xlu0 %68 }
  0x90   :  { %v84_v22 = vmul.f32 1.442695, %v83_v20  ;;  %v71_v23 = vadd.f32 %v69_v21, %v63_v19  ;;  %v77_v24 = vpop.permute.xlu1 %76 }
  0x92   :  { %202 = vpow2.f32 %v84_v22  ;;  %v79_v26 = vadd.f32 %v77_v24, %v71_v23 }
  0x94   :  { %v82_v27 = vadd.f32 %v81_v25, %v79_v26 }
  0x96   :  { %v102_v28 = vsub.f32 0.0, %v82_v27 }
  0x98   :  { %v203_v29 = vpop.eup %202  ;;  %v103_v30 = vmul.f32 1.442695, %v102_v28 }
  0x99   :  { %v86_v31 = vadd.f32 1.0, %v203_v29 }
  0x9a   :  { %204 = vpow2.f32 %v103_v30 }
  0x9b   :  { %206 = vrcp.f32 %v86_v31  ;;  %v98_v41 = vand.u32 2147483648, %v86_v31  ;;  %vm92_vm1 = vweird.f32 %v86_v31  ;;  %v96_v42 = vand.u32 2147483647, %v86_v31 }
  0x9d   :  { %v99_v48 = vor.u32 1.1754944e-38, %v98_v41  ;;  %vm97_vm4 = vcmp.eq.f32.partialorder %v96_v42, 8.507059e+37 }
  0xa0   :  { %v205_v32 = vpop.eup %204 }
  0xa1   :  { %v207_v33 = vpop.eup %206  ;;  %v105_v34 = vadd.f32 1.0, %v205_v32 }
  0xa2   :  { %v88_v35 = vmul.f32 %v207_v33, %v86_v31  ;;  %vm93_vm0 = vweird.f32 %v207_v33 }
  0xa3   :  { %208 = vrcp.f32 %v105_v34  ;;  %vm94_vm2 = vmor %vm92_vm1, %vm93_vm0  ;;  %v117_v44 = vand.u32 2147483648, %v105_v34  ;;  %v115_v47 = vand.u32 2147483647, %v105_v34  ;;  %vm111_vm5 = vweird.f32 %v105_v34 }
  0xa4   :  { %v89_v36 = vsub.f32 1.0, %v88_v35 }
  0xa5   :  { %v118_v51 = vor.u32 1.1754944e-38, %v117_v44  ;;  %vm116_vm7 = vcmp.eq.f32.partialorder %v115_v47, 8.507059e+37 }
  0xa6   :  { %v90_v37 = vmul.f32 %v207_v33, %v89_v36 }
  0xa8   :  { %v91_v39 = vadd.f32 %v207_v33, %v90_v37 }
  0xa9   :  { %v209_v38 = vpop.eup %208 }
  0xaa   :  { %v107_v40 = vmul.f32 %v209_v38, %v105_v34  ;;  %v95_v45 = vsel %vm94_vm2, %v207_v33, %v91_v39  ;;  %vm112_vm3 = vweird.f32 %v209_v38 }
  0xab   :  { %v100_v50 = vsel %vm97_vm4, %v99_v48, %v95_v45  ;;  %vm113_vm6 = vmor %vm111_vm5, %vm112_vm3 }
  0xac   :  { %v108_v43 = vsub.f32 1.0, %v107_v40  ;;  %v123_v56 = vmul.f32 %v122_v52, %v100_v50  ;;  %v133_v0 = vmul.f32 %v132_v61, %v100_v50 }
  0xae   :  { %v109_v46 = vmul.f32 %v209_v38, %v108_v43 }
  0xb0   :  { %v110_v49 = vadd.f32 %v209_v38, %v109_v46 }
  0xb2   :  { %v114_v54 = vsel %vm113_vm6, %v209_v38, %v110_v49 }
  0xb3   :  { %v119_v55 = vsel %vm116_vm7, %v118_v51, %v114_v54 }
  0xb4   :  { %v126_v57 = vmul.f32 %v125_v53, %v119_v55  ;;  %v136_v63 = vmul.f32 %v135_v59, %v119_v55 }
  0xb6   :  { %v127_v60 = vadd.f32 %v126_v57, %v123_v56  ;;  %v137_v1 = vadd.f32 %v136_v63, %v133_v0 }
  0xb8   :  { %v130_v62 = vadd.f32 %v129_v58, %v127_v60  ;;  %v140_v3 = vadd.f32 %v139_v2, %v137_v1 }
  0xba   :  { %146 = vperm.xlu2 %200, %v130_v62  }
  0xc2   :  { %151 = vperm.xlu2 %200, %v140_v3  }
 0x114   :  { %v147_v5 = vpop.permute.xlu2 %146 }
 0x11c   :  { %v152_v7 = vpop.permute.xlu2 %151 }
 0x11d   :  { %v154_v8 = vsel %vm143_vm8, %v147_v5, %v152_v7 }
 0x11e   :  { %v155_v9 = vsub.f32 0.0, %v154_v8 }
 0x120   :  { %v156_v10 = vmul.f32 1.442695, %v155_v9 }
 0x122   :  { %210 = vpow2.f32 %v156_v10 }
 0x128   :  { %v211_v11 = vpop.eup %210 }
 0x129   :  { %v158_v12 = vadd.f32 1.0, %v211_v11 }
 0x12b   :  { %212 = vrcp.f32 %v158_v12  ;;  %v170_v16 = vand.u32 2147483648, %v158_v12  ;;  %v168_v18 = vand.u32 2147483647, %v158_v12  ;;  %vm164_vm10 = vweird.f32 %v158_v12 }
 0x12d   :  { %v171_v20 = vor.u32 1.1754944e-38, %v170_v16  ;;  %vm169_vm13 = vcmp.eq.f32.partialorder %v168_v18, 8.507059e+37 }
 0x131   :  { %v213_v13 = vpop.eup %212 }
 0x132   :  { %v160_v14 = vmul.f32 %v213_v13, %v158_v12  ;;  %vm165_vm9 = vweird.f32 %v213_v13 }
 0x133   :  { %vm166_vm12 = vmor %vm164_vm10, %vm165_vm9 }
 0x134   :  { %v161_v15 = vsub.f32 1.0, %v160_v14 }
 0x136   :  { %v162_v17 = vmul.f32 %v213_v13, %v161_v15 }
 0x138   :  { %v163_v19 = vadd.f32 %v213_v13, %v162_v17 }
 0x13a   :  { %v167_v21 = vsel %vm166_vm12, %v213_v13, %v163_v19 }
 0x13b   :  { %v172_v22 = vsel %vm169_vm13, %v171_v20, %v167_v21 }
 0x13c   :  { %175 = vst.msk [vmem:[%s288_s2] sm:$0xf] %vm174_vm11, %v172_v22 }
 0x13d   :  { %180 = vsyncpa [#allocation3], 1 }
 0x13e   :  { %181 = vsyncpa [#allocation4], 1 }

</bundles_post_ra>
